<compile_context>
chip_gen: v7x
topology: tpu7x:2x2x1
jax: 0.10.0
libtpu: 0.0.40
codegen_flags: <defaults>
</compile_context>

<pallas_src>
import jax
import jax.numpy as jnp
from jax.experimental import pallas as pl
from jax.experimental.pallas import tpu as pltpu


def _router_kernel(x_ref, w_ref, b_ref, o_ref):
    # x_ref : (TA, C, TN) VMEM  -- channels on sublanes, tokens lane-dense
    # w_ref : (C, 1)      VMEM  -- 1x1 conv weight column (broadcast along lanes)
    # b_ref : (1,)        SMEM  -- bias scalar
    # o_ref : (TA, TN)    VMEM  -- lane-dense output tile
    x = x_ref[...].astype(jnp.float32)
    w = w_ref[...].astype(jnp.float32)
    # Aligned elementwise multiply + cross-sublane (XLU) reduce; no slicing.
    o_ref[...] = (jnp.sum(x * w[None, :, :], axis=1) + b_ref[0]).astype(o_ref.dtype)


def _round_up(x, m):
    return (x + m - 1) // m * m


def _default_vmem_limit_bytes():
    """Generation-aware scoped-VMEM limit (leave headroom for scratch)."""
    cap = 128 * 1024 * 1024
    try:
        cap = int(pltpu.get_tpu_info().vmem_capacity_bytes)
    except Exception:
        pass
    if cap <= 64 * 1024 * 1024:          # v7x: 64 MiB per TensorCore
        return 40 * 1024 * 1024
    return 64 * 1024 * 1024              # v5e / v6e: 128 MiB physical


def _pick_tiles(A, C, N, token_tile, budget_bytes):
    """Pick (ta, tn) so double-buffered in+out blocks -- including f32 sublane
    padding to 8 -- fit the budget; tn is a multiple of 128 (lane-dense)."""
    n_lane = _round_up(N, 128)

    def per_step_bytes(ta, tn):
        x_blk = ta * _round_up(C, 8) * tn * 4          # f32 input block
        o_blk = _round_up(ta, 8) * tn * 4              # f32 output block
        return 2 * (x_blk + o_blk)                     # double buffered

    # batch-tile candidates: A itself, or multiple-of-8 divisors of A
    cands = sorted({A} | {d for d in range(8, A, 8) if A % d == 0}, reverse=True)
    for ta in cands:
        base = per_step_bytes(ta, 128)
        if base > budget_bytes:
            continue
        tn_max = (budget_bytes // base) * 128
        tn = min(token_tile, tn_max, n_lane)
        tn = max(128, tn // 128 * 128)
        return ta, tn
    # Nothing fits even at tn=128 (very large embed_dim): smallest batch tile.
    # TODO(synk): for embed_dim >~ 512 add a channel-split "arbitrary" grid
    # axis with a VMEM accumulator instead of loading all channels per block.
    return cands[-1], 128


def token_router(x_nchw, conv_weight, conv_bias, *,
                 token_tile=2048,
                 vmem_limit_bytes=None):
    """Pallas implementation of TokenRouter.forward.

    x_nchw      : (A, C, H, W) float32   (NCHW, like the PyTorch module)
    conv_weight : (1, C, 1, 1) float32   (nn.Conv2d(C, 1, 1).weight)
    conv_bias   : (1,)          float32  (nn.Conv2d(C, 1, 1).bias)
    returns     : (A, H*W)      float32
    """
    A, C, H, W = x_nchw.shape
    N = H * W
    x = x_nchw.reshape(A, C, N)                           # glue reshape only
    w = conv_weight.reshape(C, 1).astype(jnp.float32)     # VMEM weight column
    b = conv_bias.reshape(1).astype(jnp.float32)          # SMEM bias scalar

    if vmem_limit_bytes is None:
        vmem_limit_bytes = _default_vmem_limit_bytes()
    budget = int(0.6 * vmem_limit_bytes)                  # headroom for intermediates

    ta, tn = _pick_tiles(A, C, N, token_tile, budget)

    grid_a = A // ta
    grid_t = pl.cdiv(N, tn)
    # Megacore (v7x): guarantee a "parallel" axis has >= 2 steps to shard.
    if grid_a * grid_t < 2 and tn > 128:
        tn = max(128, (tn // 2) // 128 * 128)
        grid_t = pl.cdiv(N, tn)

    out = pl.pallas_call(
        _router_kernel,
        out_shape=jax.ShapeDtypeStruct((A, N), jnp.float32),
        grid=(grid_a, grid_t),
        in_specs=[
            pl.BlockSpec((ta, C, tn), lambda a, t: (a, 0, t)),  # x: batch x chans x tokens
            pl.BlockSpec((C, 1), lambda a, t: (0, 0)),          # weight column (VMEM)
            pl.BlockSpec(memory_space=pltpu.SMEM),               # bias scalar (SMEM)
        ],
        out_specs=pl.BlockSpec((ta, tn), lambda a, t: (a, t)),   # lane-dense output slab
        compiler_params=pltpu.CompilerParams(
            dimension_semantics=("parallel", "parallel"),        # megacore sharding
            vmem_limit_bytes=vmem_limit_bytes,
        ),
    )(x, w, b)
    return out


if __name__ == "__main__":
    # Small shapes consistent with the module: batch=2, embed_dim=4, 16x16 spatial.
    A, C, H, W = 2, 4, 16, 16
    key = jax.random.PRNGKey(0)
    kx, kw, kb = jax.random.split(key, 3)

    x = jax.random.normal(kx, (A, C, H, W), dtype=jnp.float32)

    # Deterministic synthetic parameters for nn.Conv2d(embed_dim, 1, kernel_size=1):
    #   weight: (1, C, 1, 1), bias: (1,)
    conv_weight = jax.random.normal(kw, (1, C, 1, 1), dtype=jnp.float32) * 0.1
    conv_bias = jax.random.normal(kb, (1,), dtype=jnp.float32) * 0.1

    out = token_router(x, conv_weight, conv_bias)
    out = jax.block_until_ready(out)

    # Reference check (plain JAX): 1x1 conv == channel-wise dot + bias, then flatten.
    ref = (
        jnp.einsum("achw,c->ahw", x, conv_weight.reshape(C)) + conv_bias[0]
    ).reshape(A, -1)
    assert out.shape == (A, H * W), out.shape
    assert jnp.allclose(out, ref, atol=1e-5, rtol=1e-5), float(jnp.max(jnp.abs(out - ref)))

    print("KERNEL_OK")
</pallas_src>

<mosaic_0001>
module attributes {stable_mosaic.version = 11 : i64} {
  func.func @_router_kernel(%arg0: i32, %arg1: i32, %arg2: memref<2x4x128xf32, #tpu.memory_space<vmem>>, %arg3: memref<4x1xf32, #tpu.memory_space<vmem>>, %arg4: memref<1xf32, #tpu.memory_space<smem>>, %arg5: memref<2x128xf32, #tpu.memory_space<vmem>>) attributes {dimension_semantics = [#tpu.dimension_semantics<parallel>, #tpu.dimension_semantics<parallel>], iteration_bounds = array<i64: 1, 2>, scalar_prefetch = 0 : i64, scratch_operands = 0 : i64, tpu.core_type = #tpu.core_type<tc>, window_params = [{transform_indices = @transform_0, window_bounds = array<i64: 2, 4, 128>}, {pipeline_mode = #tpu.pipeline_mode<synchronous>, transform_indices = @transform_1, window_bounds = array<i64: 4, 1>}, {transform_indices = @transform_2, window_bounds = array<i64: 1>}, {transform_indices = @transform_3, window_bounds = array<i64: 2, 128>}]} {
    %c0 = arith.constant 0 : index
    %c0_0 = arith.constant 0 : index
    %c0_1 = arith.constant 0 : index
    %0 = vector.load %arg2[%c0, %c0_0, %c0_1] : memref<2x4x128xf32, #tpu.memory_space<vmem>>, vector<2x4x128xf32>
    %c0_2 = arith.constant 0 : index
    %c0_3 = arith.constant 0 : index
    %1 = vector.load %arg3[%c0_2, %c0_3] : memref<4x1xf32, #tpu.memory_space<vmem>>, vector<4x1xf32>
    %2 = vector.shape_cast %1 : vector<4x1xf32> to vector<1x4x1xf32>
    %3 = vector.broadcast %2 : vector<1x4x1xf32> to vector<2x4x128xf32>
    %4 = arith.mulf %0, %3 : vector<2x4x128xf32>
    %cst = arith.constant dense<0.000000e+00> : vector<2x128xf32>
    %5 = vector.multi_reduction <add>, %4, %cst [1] : vector<2x4x128xf32> to vector<2x128xf32>
    %c0_4 = arith.constant 0 : index
    %6 = memref.load %arg4[%c0_4] : memref<1xf32, #tpu.memory_space<smem>>
    %7 = vector.broadcast %6 : f32 to vector<2x128xf32>
    %8 = arith.addf %5, %7 : vector<2x128xf32>
    %c0_5 = arith.constant 0 : index
    %c0_6 = arith.constant 0 : index
    %9 = vector.load %arg5[%c0_5, %c0_6] : memref<2x128xf32, #tpu.memory_space<vmem>>, vector<2x128xf32>
    tpu.vector_store %arg5[%c0_5, %c0_6], %8 {strides = array<i32>} : memref<2x128xf32, #tpu.memory_space<vmem>>, vector<2x128xf32>,
    return
  }
  func.func @transform_0(%arg0: i32, %arg1: i32) -> (i32, i32, i32) {
    %c0_i32 = arith.constant 0 : i32
    %c0_i32_0 = arith.constant 0 : i32
    return %arg0, %c0_i32, %arg1 : i32, i32, i32
  }
  func.func @transform_1(%arg0: i32, %arg1: i32) -> (i32, i32) {
    %c0_i32 = arith.constant 0 : i32
    %c0_i32_0 = arith.constant 0 : i32
    %c0_i32_1 = arith.constant 0 : i32
    return %c0_i32, %c0_i32_0 : i32, i32
  }
  func.func @transform_2(%arg0: i32, %arg1: i32) -> i32 {
    %c0_i32 = arith.constant 0 : i32
    %c0_i32_0 = arith.constant 0 : i32
    return %c0_i32 : i32
  }
  func.func @transform_3(%arg0: i32, %arg1: i32) -> (i32, i32) {
    %c0_i32 = arith.constant 0 : i32
    return %arg0, %arg1 : i32, i32
  }
}

</mosaic_0001>

<bundles_post_ra>
// kernel: tpu_custom_call.1
= control target key start
LH: loop header
LB: loop body
LE: loop exit
PB: predicated region body
PF: predicated region fallthrough
CT: control target
= control target key end

     0   :  { %s854_s0 = inlined_call_operand.hbm [shape: f32[2,4,256], index: 0, kind: input, shape index: {}]   ;;  %s855_s1 = inlined_call_operand.hbm [shape: f32[4,1], index: 1, kind: input, shape index: {}]   ;;  %s856_s2 = inlined_call_operand.<no memory space> [shape: f32[1], index: 2, kind: input, shape index: {}]   ;;  %s857_s3 = inlined_call_operand.hbm [shape: f32[2,256], index: 3, kind: output, shape index: {}]  }
   0x1   :  { %8 = sst [smem:[#allocation2]] %s856_s2 }
   0x2   :  { %9 = vsyncpa [#allocation4], 0 }
   0x3   :  { %11 = vsyncpa [#allocation4 + $0x1], 0 }
   0x4   :  { %12 = vsyncpa [#allocation7], 0 }
   0x5   :  { %13 = vsyncpa [#allocation5], 0 }
   0x6   :  { %15 = vsyncpa [#allocation5 + $0x1], 0  ;;  %s634_s14 = smov 0   ;;  %s636_s15 = smov 0  }
   0x7   :  { %s638_s16 = smov 0   ;;  %s640_s17 = smov 0  }
   0x8   :  { %s642_s18 = smov 0   ;;  %s644_s19 = smov 0  }
   0x9 LB: > { %s365_s2 = sadd.s32 4294967295, %s602_s19   ;;  %s366_s20 = sadd.s32 4294967294, %s602_s19   ;;  %s602_s19 = sphi %s644_s19, %s21_s19   ;;  %s598_s18 = sphi %s642_s18, %s885_s18   ;;  %s594_s17 = sphi %s640_s17, %s884_s17   ;;  %s590_s16 = sphi %s638_s16, %s883_s16   ;;  %s586_s15 = sphi %s636_s15, %s882_s15   ;;  %s582_s14 = sphi %s634_s14, %s881_s14  }
   0xa   : > { %s42_s21 = sadd.s32 1, %s590_s16  ;;  %p49_p0 = scmp.ne.s32.totalorder %s590_s16, %s586_s15 }
   0xb   : > { %p50_p1 = scmp.eq.s32.totalorder %s602_s19, 0  ;;  %p55_p2 = scmp.ne.s32.totalorder %s586_s15, %s582_s14 }
   0xc   : > { %p672_p3 = scmp.eq.s32.totalorder %s365_s2, 0  ;;  %p123_p4 = scmp.eq.s32.totalorder %s365_s2, 1 }
   0xd   : > { %p676_p5 = por %p50_p1, %p49_p0  ;;  %p129_p6 = scmp.eq.s32.totalorder %s366_s20, 1 }
   0xe   : > { %s864_s22 = scalar_select %p672_p3, 1, 0 }
   0xf   : > { %p682_p7 = por %p672_p3, %p55_p2  ;;  %p686_p8 = por %p123_p4, %p49_p0 }
  0x10   : > { %p690_p9 = por %p129_p6, %p55_p2  ;;  %p367_p10 = scmp.ge.s32.totalorder %s602_s19, 1 }
  0x11   : > { %s866_s24 = scalar_select %p682_p7, 1, 0 }
  0x12   : > { %s867_s25 = scalar_select %p686_p8, 1, 0 }
  0x13   : > { %s868_s26 = scalar_select %p690_p9, 1, 0 }
  0x14   : > { %p136_p11 = scmp.lt.s32.totalorder %s602_s19, 3  ;;  %s604_s28 = smov [#allocation6]  }
  0x15   : > { %s149_s29 = sshll.u32 %s604_s28, 4  ;;  %p401_p1 = scmp.lt.s32.totalorder %s602_s19, 2  ;;  %s150_s29 = int_to_ptr.vmem [resolvable:$true] %s149_s29 }
  0x16   : > { %p697_p13 = pnand %p367_p10, %p136_p11  ;;  %s30_s5 = sadd.s32 1, %s598_s18 }
  0x17   : > { %p706_p4 = pnand %p401_p1, %p676_p5  ;;  %p717_p6 = scmp.ge.s32.totalorder %s30_s5, 2 }
  0x18   : > { %s869_s27 = scalar_select %p697_p13, 1, 0 }
  0x19   : > { %p388_p0 = pneg %p697_p13  ;;  %s163_s7 = sand.u32 1, %s590_s16  }
  0x1a   : > { %s870_s30 = scalar_select %p706_p4, 1, 0 }
  0x1b   : > { %p712_p2 = pnand %p388_p0, %p672_p3  ;;  %s458_s10 = scalar_lea.hbm %s855_s1, 64 }
  0x1c   : > { %s872_s6 = scalar_select %p717_p6, 1, 0 }
  0x1d   : > { %p459_p5 = scmp.ne.s32.totalorder %s855_s1, %s458_s10  ;;  %p460_p10 = pneg %p712_p2 }
  0x1e   : > { %p465_p0 = scmp.lt.u32.totalorder %s458_s10, %s855_s1 }
  0x1f   : > { %p461_p11 = pnand %p460_p10, %p459_p5 }
  0x21   : > { %p462_p1 = pneg %p461_p11 }
  0x23   : > { %p467_p12 = pnand %p465_p0, %p462_p1 }
  0x25   : > { %470 = shalt.err (!%p467_p12)
}
  0x26   : > { %s471_s20 = scalar_lea.vmem %s150_s29, 64  ;;  %p479_p7 = scmp.lt.s32.totalorder %s150_s29, %s150_s29 }
  0x27   : > { %p472_p9 = scmp.ne.s32.totalorder %s150_s29, %s471_s20  ;;  %p480_p13 = scmp.lt.s32.totalorder %s471_s20, %s471_s20 }
  0x29   : > { %p474_p8 = pnand %p472_p9, %p460_p10  ;;  %p481_p4 = por %p480_p13, %p479_p7 }
  0x2b   : > { %p475_p3 = pneg %p474_p8 }
  0x2d   : > { %p482_p6 = pnand %p481_p4, %p475_p3 }
  0x2f   : > { %485 = shalt.err (!%p482_p6)
}
  0x30   : > { %391 = dma.hbm_to_vmem [thread:$0]  (!%p712_p2), %s855_s1, 64, %s150_s29, [#allocation7]  }
  0x31   : > { %p873_p9 = scmp.ne.s32.totalorder %s872_s6, 0  ;;  %s370_s8 = sshll.u32 %s163_s7, 3 }
  0x32   : > { %s371_s10 = sshll.u32 %s598_s18, 6  ;;  %s167_s13 = scalar_lea.vmem [#allocation3], %s370_s8 }
  0x33   : > { %s887_s5 = smov (%p873_p9, %s30_s5), 0  ;;  %s748_s12 = scalar_lea.hbm %s854_s0, %s371_s10 }
  0x34   : > { %s38_s9 = ssub.s32 %s598_s18, %s887_s5  ;;  %s176_s2 = sshll.u32 %s167_s13, 4  ;;  %s755_s2 = int_to_ptr.vmem [resolvable:$true] %s176_s2 }
  0x35   : > { %p40_p3 = scmp.eq.s32.totalorder %s38_s9, 0  ;;  %s757_s6 = scalar_lea.sflag [#allocation4], %s163_s7 }
  0x36   : > { %s486_s20 = scalar_lea.hbm %s748_s12, 128  ;;  %p874_p8 = scmp.ne.s32.totalorder %s870_s30, 0 }
  0x37   : > { %s753_s29 = scalar_select %p40_p3, %s590_s16, %s42_s21  }
  0x38   : > { %p487_p7 = scmp.ne.s32.totalorder %s748_s12, %s486_s20  ;;  %p488_p12 = pneg %p874_p8 }
  0x39   : > { %s491_s8 = scalar_lea.hbm %s854_s0, 256  ;;  %p492_p2 = scmp.lt.u32.totalorder %s748_s12, %s854_s0 }
  0x3a   : > { %p489_p13 = pnand %p488_p12, %p487_p7  ;;  %p493_p6 = scmp.lt.u32.totalorder %s491_s8, %s486_s20 }
  0x3b   : > { %p495_p10 = scmp.lt.u32.totalorder %s486_s20, %s748_s12 }
  0x3c   : > { %p490_p4 = pneg %p489_p13  ;;  %p494_p5 = por %p493_p6, %p492_p2 }
  0x3e   : > { %p496_p11 = por %p495_p10, %p494_p5 }
  0x40   : > { %p497_p1 = pnand %p496_p11, %p490_p4 }
  0x42   : > { %500 = shalt.err (!%p497_p1)
}
  0x43   : > { %s501_s21 = scalar_lea.vmem %s755_s2, 128  ;;  %s605_s7 = smov [#allocation3]  }
  0x44   : > { %p502_p0 = scmp.ne.s32.totalorder %s755_s2, %s501_s21  ;;  %s506_s4 = sshll.u32 %s605_s7, 4  ;;  %s507_s4 = int_to_ptr.vmem [resolvable:$false] %s506_s4 }
  0x45   : > { %s508_s11 = scalar_lea.vmem %s507_s4, 256  ;;  %p509_p7 = scmp.lt.s32.totalorder %s755_s2, %s507_s4 }
  0x46   : > { %p504_p9 = pnand %p502_p0, %p488_p12  ;;  %p510_p13 = scmp.lt.s32.totalorder %s508_s11, %s501_s21 }
  0x48   : > { %p505_p3 = pneg %p504_p9  ;;  %p511_p2 = por %p510_p13, %p509_p7 }
  0x4a   : > { %p512_p6 = pnand %p511_p2, %p505_p3 }
  0x4c   : > { %515 = shalt.err (!%p512_p6)
}
  0x4d   : > { %s606_s13 = smov 128   ;;  %s607_s20 = smov 64  }
  0x4e   : > { %s608_s23 = smov 4   ;;  %p875_p12 = scmp.ne.s32.totalorder %s869_s27, 0 }
  0x4f   : > { %395 = dma.hbm_to_vmem [thread:$0]  (!%p874_p8), %s748_s12, 128, %s755_s2, %s757_s6, %s606_s13, %s607_s20, %s608_s23  }
  0x50   : > { %188 = sbr.rel (%p875_p12) target bundleno = 253 (0xfd), region = 32  ;;  %s788_s28 = sand.u32 (!%p875_p12), 1, %s586_s15  }
  0x51   : > { %s373_s8 = sshll.u32 (!%p875_p12), %s788_s28, 3  ;;  %s191_s9 = scalar_lea.sflag (!%p875_p12), [#allocation4], %s788_s28 }
  0x52   : > { %s194_s10 = scalar_lea.vmem (!%p875_p12), [#allocation3], %s373_s8  ;;  %p876_p4 = scmp.ne.s32.totalorder (!%p875_p12), %s866_s24, 0 }
  0x57   : > { %569 = dma.done.wait (%p876_p4), %s191_s9, 128  }
  0x58   : > { %571 = vsyncadd (%p876_p4), %s191_s9, 4294967168  ;;  %p877_p5 = scmp.ne.s32.totalorder %s864_s22, 0 }
  0x5a   : > { %573 = dma.done.wait (%p877_p5), [#allocation7], 64  }
  0x5b   : > { %575 = vsyncadd (%p877_p5), [#allocation7], 4294967232  ;;  %v609_v0 = vmov 0   ;;  %v224_v1 = vld [vmem:[#allocation6] sm:$0xf]  ;;  %vm232_vm0 = vcmask 1043456  }
  0x5c   : > { %457 = vset.pattern.permute.xlu0 %v609_v0  ;;  %v222_v2 = vld [vmem:[%s194_s10] sm:$0xf]  ;;  %v223_v3 = vld [vmem:[%s194_s10 + $0x4] sm:$0xf]  ;;  %s247_s24 = sld [smem:[#allocation2]]  ;;  %s375_s22 = sshll.u32 %s788_s28, 1 }
  0x5d   : > { %227 = vperm.xlu0 %457, %v224_v1   ;;  %s377_s27 = sshll.u32 %s594_s17, 5  ;;  %s220_s30 = scalar_lea.vmem [#allocation8], %s375_s22  ;;  %vm253_vm1 = vcmask 1041409  }
  0x5e   : > { %s273_s12 = sshll.u32 %s220_s30, 4  ;;  %s805_s21 = scalar_lea.hbm %s857_s3, %s377_s27  ;;  %s807_s12 = int_to_ptr.vmem [resolvable:$true] %s273_s12 }
  0x5f   : > { %s258_s7 = scalar_lea.sflag [#allocation5], %s788_s28  ;;  %s516_s4 = scalar_lea.vmem %s807_s12, 32 }
  0x60   : > { %p517_p8 = scmp.ne.s32.totalorder %s807_s12, %s516_s4  ;;  %p878_p10 = scmp.ne.s32.totalorder %s867_s25, 0 }
  0x61   : > { %s610_s17 = smov [#allocation8]  }
  0x62   : > { %v248_v19 = vstv %s247_s24  ;;  %p518_p11 = pnand %p517_p8, %p878_p10  ;;  %s520_s11 = sshll.u32 %s610_s17, 4  ;;  %s521_s11 = int_to_ptr.vmem [resolvable:$false] %s520_s11 }
  0x63   : > { %s522_s13 = scalar_lea.vmem %s521_s11, 64  ;;  %p523_p0 = scmp.lt.s32.totalorder %s807_s12, %s521_s11 }
  0x64   : > { %p519_p1 = pneg %p518_p11  ;;  %p524_p9 = scmp.lt.s32.totalorder %s522_s13, %s516_s4 }
  0x66   : > { %p525_p3 = por %p524_p9, %p523_p0 }
  0x68   : > { %p526_p7 = pnand %p525_p3, %p519_p1 }
  0xdc   : > { %v228_v4 = vpop.permute.xlu0 %227 }
  0xdd   : > { %v230_v5 = vmul.f32 %v228_v4, %v222_v2  ;;  %v231_v6 = vmul.f32 %v228_v4, %v223_v3 }
  0xdf   : > { %v233_v7 = vsel %vm232_vm0, %v230_v5, 0.0  ;;  %v240_v8 = vsel %vm232_vm0, %v231_v6, 0.0 }
  0xe0   : > { %v234_v9 = vrot.slane %v233_v7, 4  ;;  %v241_v10 = vrot.slane %v240_v8, 4 }
  0xe2   : > { %v235_v11 = vadd.f32 %v234_v9, %v233_v7  ;;  %v242_v12 = vadd.f32 %v241_v10, %v240_v8 }
  0xe4   : > { %v236_v13 = vrot.slane %v235_v11, 2  ;;  %v243_v14 = vrot.slane %v242_v12, 2 }
  0xe6   : > { %v237_v15 = vadd.f32 %v236_v13, %v235_v11  ;;  %v244_v16 = vadd.f32 %v243_v14, %v242_v12 }
  0xe8   : > { %v238_v17 = vrot.slane %v237_v15, 1  ;;  %v245_v18 = vrot.slane %v244_v16, 1 }
  0xea   : > { %v239_v20 = vadd.f32 %v238_v17, %v237_v15  ;;  %v246_v21 = vadd.f32 %v245_v18, %v244_v16 }
  0xec   : > { %v249_v22 = vadd.f32 %v248_v19, %v239_v20  ;;  %v250_v23 = vadd.f32 %v248_v19, %v246_v21 }
  0xee   : > { %v254_v24 = vsel %vm253_vm1, %v250_v23, %v249_v22 }
  0xef   : > { %256 = vst [vmem:[%s220_s30] sm:$0x3] %v254_v24 }
  0xf0   : > { %529 = shalt.err (!%p526_p7)
}
  0xf1   : > { %s530_s20 = scalar_lea.hbm %s805_s21, 32  ;;  %s534_s8 = scalar_lea.hbm %s857_s3, 64 }
  0xf2   : > { %p531_p13 = scmp.ne.s32.totalorder %s805_s21, %s530_s20  ;;  %p535_p12 = scmp.lt.u32.totalorder %s805_s21, %s857_s3 }
  0xf3   : > { %p536_p4 = scmp.lt.u32.totalorder %s534_s8, %s530_s20  ;;  %p538_p8 = scmp.lt.u32.totalorder %s530_s20, %s805_s21 }
  0xf4   : > { %p532_p2 = pnand %p531_p13, %p878_p10 }
  0xf5   : > { %p537_p5 = por %p536_p4, %p535_p12 }
  0xf6   : > { %p533_p6 = pneg %p532_p2 }
  0xf7   : > { %p539_p11 = por %p538_p8, %p537_p5 }
  0xf9   : > { %p540_p1 = pnand %p539_p11, %p533_p6 }
  0xfb   : > { %543 = shalt.err (!%p540_p1)
}
  0xfc   : > { %386 = dma.vmem_to_hbm [thread:$0]  (%p878_p10), %s807_s12, 32, %s805_s21, %s258_s7  }
  0xfd PF: > { %s285_s24 = sand.u32 1, %s582_s14   ;;  %p879_p0 = scmp.ne.s32.totalorder %s868_s26, 0 }
  0xfe   : > { %p880_p9 = scmp.ge.s32.totalorder %s602_s19, 2  ;;  %s286_s22 = scalar_lea.sflag [#allocation5], %s285_s24 }
 0x100   : > { %p397_p3 = pnand %p880_p9, %p879_p0 }
 0x102   : > { %577 = dma.done.wait (!%p397_p3), %s286_s22, 32  }
 0x103   : > { %579 = vsyncadd (!%p397_p3), %s286_s22, 4294967264  ;;  %s21_s19 = sadd.s32 1, %s602_s19   ;;  %s881_s14 = smov %s586_s15 }
 0x104   : > { %p18_p7 = scmp.ge.s32.totalorder %s21_s19, 4   ;;  %s882_s15 = smov %s590_s16 }
 0x105   : > { %s883_s16 = smov %s753_s29  ;;  %s884_s17 = smov %s598_s18 }
 0x106   : > { %s885_s18 = smov %s887_s5  ;;  %20 = sbr.rel (!%p18_p7) target bundleno = 9 (0x9), region = 81 }
 0x10d   :  { %291 = vsyncpa [#allocation4], 1 }
 0x10e   :  { %293 = vsyncpa [#allocation4 + $0x1], 1 }
 0x10f   :  { %294 = vsyncpa [#allocation7], 1 }
 0x110   :  { %295 = vsyncpa [#allocation5], 1 }
 0x111   :  { %297 = vsyncpa [#allocation5 + $0x1], 1 }

</bundles_post_ra>
